<compile_context>
chip_gen: v5e
topology: v5e:2x2
jax: 0.10.0
libtpu: 0.0.40
codegen_flags: <defaults>
</compile_context>

<pallas_src>
import math

import jax
import jax.numpy as jnp
from jax.experimental import pallas as pl
from jax.experimental.pallas import tpu as pltpu


# ------------------------------- Pallas kernel -------------------------------
def _learned_proj_kernel(sid_ref, x_ref, w_ref, o_ref):
    # sid_ref: (B, S) int32 scalar-prefetch ref in SMEM.  Unused in the body —
    #          the weight gather already happened via the BlockSpec index_map.
    # x_ref:   (1, 1, GH, PW)  all heads of one (batch, seq) position.
    # w_ref:   (1, PW, PW)     weight[seq_id[b, s]]  laid out as [out, inp].
    # o_ref:   (1, 1, GH, PW)
    del sid_ref
    x = x_ref[0, 0]            # (GH, PW_in)
    w = w_ref[0]               # (PW_out, PW_in)
    # out[g, o] = sum_i x[g, i] * w[o, i]   (einsum '... out inp, ... inp -> ... out')
    acc = jax.lax.dot_general(
        x, w,
        dimension_numbers=(((1,), (1,)), ((), ())),
        preferred_element_type=jnp.float32,
        precision=jax.lax.Precision.HIGHEST,   # true-f32 MXU passes for the check
    )
    o_ref[0, 0] = acc.astype(o_ref.dtype)


def learned_projection_pallas(x, seq_id, weight):
    """LearnedProjection.forward.

    x:       [*batch, group, hpg, seq, proj_width]
    seq_id:  [*batch, 1, 1, seq]   (broadcast #group / #hpg axes)
    weight:  [max_len, proj_width, proj_width]
    """
    *lead, G, HPG, S, PW = x.shape
    B = 1
    for d in lead:
        B *= d
    GH = G * HPG

    # seq_id must broadcast over the group/hpg axes; per-group ids would be
    # silently misread by the reshape below, so guard explicitly.
    assert seq_id.shape[-3] == 1 and seq_id.shape[-2] == 1, (
        "seq_id group/hpg axes must be broadcast (size-1)")
    assert seq_id.shape[-1] == S
    sid = seq_id.reshape(B, S).astype(jnp.int32)

    # Present a sublane/lane-dense [GH, PW] tile per (batch, seq) position:
    # heads on sublanes, proj_width on lanes (lane-dense stores).
    xk = x.reshape(B, GH, S, PW).transpose(0, 2, 1, 3)          # [B, S, GH, PW]

    grid_spec = pltpu.PrefetchScalarGridSpec(
        num_scalar_prefetch=1,
        grid=(B, S),
        in_specs=[
            pl.BlockSpec((1, 1, GH, PW), lambda b, s, sid_ref: (b, s, 0, 0)),
            # Data-dependent weight gather: pick the per-position projection
            # matrix directly from the HBM table using the prefetched seq_id.
            pl.BlockSpec((1, PW, PW), lambda b, s, sid_ref: (sid_ref[b, s], 0, 0)),
        ],
        out_specs=pl.BlockSpec((1, 1, GH, PW), lambda b, s, sid_ref: (b, s, 0, 0)),
    )

    out = pl.pallas_call(
        _learned_proj_kernel,
        out_shape=jax.ShapeDtypeStruct((B, S, GH, PW), x.dtype),
        grid_spec=grid_spec,
        compiler_params=pltpu.CompilerParams(
            dimension_semantics=("parallel", "parallel"),
        ),
    )(sid, xk, weight)

    return out.transpose(0, 2, 1, 3).reshape(x.shape)


# ---------------------------- module-like wrapper -----------------------------
class LearnedProjectionPallas:
    """JAX/Pallas equivalent of uni2ts LearnedProjection (forward only)."""

    def __init__(self, *, proj_width, num_heads, num_groups, max_len=512, key=None):
        assert num_heads % num_groups == 0 and num_heads >= num_groups
        self.proj_width = proj_width
        self.num_heads = num_heads
        self.num_groups = num_groups
        self.heads_per_group = num_heads // num_groups
        self.max_len = max_len
        if key is None:
            key = jax.random.PRNGKey(0)
        # kaiming_uniform_(a=sqrt(5)) on a [PW, PW] matrix -> U(-1/sqrt(PW), 1/sqrt(PW))
        # (same distribution as torch; not bit-identical RNG).
        bound = 1.0 / math.sqrt(proj_width)
        self.weight = jax.random.uniform(
            key, (max_len, proj_width, proj_width),
            minval=-bound, maxval=bound, dtype=jnp.float32)

    def __call__(self, x, seq_id):
        return learned_projection_pallas(x, seq_id, self.weight)


# ------------------------------ pure-JAX reference ----------------------------
def _ref_forward(weight, x, seq_id):
    w = weight[seq_id]                                     # [*batch, 1, 1, S, PW, PW]
    return jnp.einsum('...oi,...i->...o', w, x,
                      precision=jax.lax.Precision.HIGHEST)


# ------------------------------------ main ------------------------------------
if __name__ == "__main__":
    B = 2
    num_heads = 8
    num_groups = 2
    hpg = num_heads // num_groups
    proj_width = 64
    max_len = 32
    seq = 16

    root = jax.random.PRNGKey(0)
    k_w, k_x, k_id = jax.random.split(root, 3)

    mod = LearnedProjectionPallas(
        proj_width=proj_width, num_heads=num_heads, num_groups=num_groups,
        max_len=max_len, key=k_w)

    x = jax.random.normal(
        k_x, (B, num_groups, hpg, seq, proj_width), dtype=jnp.float32)
    seq_id = jax.random.randint(k_id, (B, 1, 1, seq), 0, max_len, dtype=jnp.int32)

    out = mod(x, seq_id)
    out = jax.block_until_ready(out)

    ref = _ref_forward(mod.weight, x, seq_id)
    assert out.shape == x.shape
    assert jnp.allclose(out, ref, atol=1e-5, rtol=1e-5)

    print("KERNEL_OK")
</pallas_src>

<mosaic_0001>
module attributes {stable_mosaic.version = 11 : i64} {
  func.func @_learned_proj_kernel(%arg0: i32, %arg1: i32, %arg2: memref<2x16xi32, #tpu.memory_space<smem>>, %arg3: memref<1x1x8x64xf32, #tpu.memory_space<vmem>>, %arg4: memref<1x64x64xf32, #tpu.memory_space<vmem>>, %arg5: memref<1x1x8x64xf32, #tpu.memory_space<vmem>>) attributes {dimension_semantics = [#tpu.dimension_semantics<parallel>, #tpu.dimension_semantics<parallel>], iteration_bounds = array<i64: 2, 16>, scalar_prefetch = 1 : i64, scratch_operands = 0 : i64, tpu.core_type = #tpu.core_type<tc>, window_params = [{transform_indices = @transform_0, window_bounds = array<i64: 1, 1, 8, 64>}, {transform_indices = @transform_1, window_bounds = array<i64: 1, 64, 64>}, {transform_indices = @transform_2, window_bounds = array<i64: 1, 1, 8, 64>}]} {
    %c0 = arith.constant 0 : index
    %c0_0 = arith.constant 0 : index
    %c0_1 = arith.constant 0 : index
    %c0_2 = arith.constant 0 : index
    %0 = vector.load %arg3[%c0, %c0_0, %c0_1, %c0_2] : memref<1x1x8x64xf32, #tpu.memory_space<vmem>>, vector<1x1x8x64xf32>
    %1 = vector.shape_cast %0 : vector<1x1x8x64xf32> to vector<8x64xf32>
    %c0_3 = arith.constant 0 : index
    %c0_4 = arith.constant 0 : index
    %c0_5 = arith.constant 0 : index
    %2 = vector.load %arg4[%c0_3, %c0_4, %c0_5] : memref<1x64x64xf32, #tpu.memory_space<vmem>>, vector<1x64x64xf32>
    %3 = vector.shape_cast %2 : vector<1x64x64xf32> to vector<64x64xf32>
    %cst = arith.constant dense<0.000000e+00> : vector<8x64xf32>
    %4 = tpu.matmul %1, %3, %cst {dimension_numbers = #tpu.dot_dimension_numbers<[1], [1], [0], [0], [0, 0, 1, 0], [], []>, precision = #tpu.contract_precision<fp32>} : vector<8x64xf32>, vector<64x64xf32>, vector<8x64xf32> -> vector<8x64xf32>
    %c0_6 = arith.constant 0 : index
    %c0_7 = arith.constant 0 : index
    %c0_8 = arith.constant 0 : index
    %c0_9 = arith.constant 0 : index
    %5 = vector.load %arg5[%c0_6, %c0_7, %c0_8, %c0_9] : memref<1x1x8x64xf32, #tpu.memory_space<vmem>>, vector<1x1x8x64xf32>
    %6 = vector.shape_cast %5 : vector<1x1x8x64xf32> to vector<8x64xf32>
    %7 = vector.shape_cast %4 : vector<8x64xf32> to vector<1x1x8x64xf32>
    tpu.vector_store %arg5[%c0_6, %c0_7, %c0_8, %c0_9], %7 {strides = array<i32>} : memref<1x1x8x64xf32, #tpu.memory_space<vmem>>, vector<1x1x8x64xf32>,
    return
  }
  func.func @transform_0(%arg0: i32, %arg1: i32, %arg2: memref<2x16xi32, #tpu.memory_space<smem>>) -> (i32, i32, i32, i32) {
    %c0_i32 = arith.constant 0 : i32
    %c0_i32_0 = arith.constant 0 : i32
    %c0_i32_1 = arith.constant 0 : i32
    return %arg0, %arg1, %c0_i32, %c0_i32_0 : i32, i32, i32, i32
  }
  func.func @transform_1(%arg0: i32, %arg1: i32, %arg2: memref<2x16xi32, #tpu.memory_space<smem>>) -> (i32, i32, i32) {
    %0 = arith.index_cast %arg0 : i32 to index
    %1 = arith.index_cast %arg1 : i32 to index
    %2 = memref.load %arg2[%0, %1] : memref<2x16xi32, #tpu.memory_space<smem>>
    %c0_i32 = arith.constant 0 : i32
    %c0_i32_0 = arith.constant 0 : i32
    %c0_i32_1 = arith.constant 0 : i32
    return %2, %c0_i32, %c0_i32_0 : i32, i32, i32
  }
  func.func @transform_2(%arg0: i32, %arg1: i32, %arg2: memref<2x16xi32, #tpu.memory_space<smem>>) -> (i32, i32, i32, i32) {
    %c0_i32 = arith.constant 0 : i32
    %c0_i32_0 = arith.constant 0 : i32
    %c0_i32_1 = arith.constant 0 : i32
    return %arg0, %arg1, %c0_i32, %c0_i32_0 : i32, i32, i32, i32
  }
}

</mosaic_0001>

<bundles_post_ra>
// kernel: tpu_custom_call.1
= control target key start
LH: loop header
LB: loop body
LE: loop exit
PB: predicated region body
PF: predicated region fallthrough
CT: control target
= control target key end

     0   :  { %s1002_s15 = smov [#allocation3]   ;;  %s1404_s0 = inlined_call_operand.hbm [shape: s32[2,16], index: 0, kind: input, shape index: {}]   ;;  %s1405_s1 = inlined_call_operand.hbm [shape: f32[2,16,8,64], index: 1, kind: input, shape index: {}]   ;;  %s1406_s2 = inlined_call_operand.hbm [shape: f32[32,64,64], index: 2, kind: input, shape index: {}]   ;;  %s1407_s3 = inlined_call_operand.hbm [shape: f32[2,16,8,64], index: 3, kind: output, shape index: {}]  }
   0x1   :  { %1415 = sst [smem:[#allocation22_spill]] %s1405_s1  ;;  %s9_s14 = sshll.u32 %s1404_s0, 4  ;;  %s10_s14 = int_to_ptr.hbm [resolvable:$true] %s9_s14 }
   0x2   :  { %1416 = sst [smem:[#allocation23_spill]] %s1407_s3 }
   0x3   :  { %12 = dma.hbm_to_smem %s10_s14, 32, %s1002_s15, [#allocation2] }
   0x4   :  { %944 = dma.done.wait [#allocation2], 32 }
   0x5   :  { %945 = vsyncadd [#allocation2], 4294967264 }
   0x6   :  { %15 = sfence }
   0x7   :  { %16 = vsyncpa [#allocation5], 0 }
   0x8   :  { %18 = vsyncpa [#allocation5 + $0x1], 0 }
   0x9   :  { %19 = vsyncpa [#allocation8], 0 }
   0xa   :  { %21 = vsyncpa [#allocation8 + $0x1], 0 }
   0xb   :  { %22 = vsyncpa [#allocation6], 0 }
   0xc   :  { %24 = vsyncpa [#allocation6 + $0x1], 0  ;;  %s1028_s16 = smov 0   ;;  %s1030_s17 = smov 0  }
   0xd   :  { %s1032_s18 = smov 0   ;;  %s1034_s19 = smov 0  }
   0xe   :  { %s1036_s0 = smov 0   ;;  %s1038_s20 = smov 0  }
   0xf   :  { %s1040_s21 = smov 0   ;;  %s1042_s22 = smov 0  }
  0x10   :  { %s1044_s23 = smov 0   ;;  %s1046_s24 = smov 0  }
  0x11   :  { %s1048_s25 = smov 0  }
  0x12 LB: > { %1417 = sst [smem:[#allocation16_spill]] %s980_s20  ;;  %s1408_s26 = sadd.s32 4294967295, %s1000_s25   ;;  %s1000_s25 = sphi %s1048_s25, %s30_s25   ;;  %s996_s24 = sphi %s1046_s24, %s1442_s24   ;;  %s992_s23 = sphi %s1044_s23, %s1441_s23   ;;  %s988_s22 = sphi %s1042_s22, %s1440_s22   ;;  %s984_s21 = sphi %s1040_s21, %s1439_s21   ;;  %s980_s20 = sphi %s1038_s20, %s1438_s20   ;;  %s976_s0 = sphi %s1036_s0, %s1447_s0   ;;  %s972_s19 = sphi %s1034_s19, %s1446_s19   ;;  %s968_s18 = sphi %s1032_s18, %s1445_s18   ;;  %s964_s17 = sphi %s1030_s17, %s1444_s17   ;;  %s960_s16 = sphi %s1028_s16, %s1443_s16  }
  0x13   : > { %1418 = sst [smem:[#allocation17_spill]] %s992_s23  ;;  %s39_s28 = sadd.s32 1, %s992_s23 }
  0x14   : > { %1419 = sst [smem:[#allocation18_spill]] %s996_s24  ;;  %p40_p0 = scmp.ge.s32.totalorder %s39_s28, 16 }
  0x15   : > { %s42_s29 = sadd.s32 1, %s996_s24  ;;  %s51_s30 = sadd.s32 1, %s980_s20 }
  0x16   : > { %p58_p1 = scmp.ne.s32.totalorder %s980_s20, %s976_s0  ;;  %s1449_s28 = smov (%p40_p0, %s39_s28), 0 }
  0x17   : > { %1420 = sst [smem:[#allocation19_spill]] %s1449_s28  ;;  %s1451_s29 = smov (!%p40_p0, %s42_s29), %s996_s24 }
  0x18   : > { %s47_s4 = ssub.s32 %s992_s23, %s1449_s28  ;;  %p59_p2 = scmp.eq.s32.totalorder %s1000_s25, 0 }
  0x19   : > { %p44_p3 = scmp.ge.s32.totalorder %s1451_s29, 2  ;;  %p64_p4 = scmp.ne.s32.totalorder %s976_s0, %s972_s19 }
  0x1a   : > { %p1103_p5 = por %p59_p2, %p58_p1  ;;  %p1109_p6 = scmp.eq.s32.totalorder %s1408_s26, 0 }
  0x1b   : > { %s1453_s29 = smov (%p44_p3, %s1451_s29), 0  ;;  %s82_s8 = sshra.s32 %s1449_s28, 7 }
  0x1c   : > { %1423 = sst [smem:[#allocation20_spill]] %s1453_s29  ;;  %p1120_p7 = por %p1109_p6, %p64_p4 }
  0x1d   : > { %s46_s9 = ssub.s32 %s996_s24, %s1453_s29  ;;  %s84_s10 = sadd.s32 %s82_s8, %s1453_s29 }
  0x1e   : > { %s48_s11 = sor.u32 %s47_s4, %s46_s9  ;;  %s666_s12 = sshll.u32 %s84_s10, 7 }
  0x1f   : > { %p49_p8 = scmp.eq.s32.totalorder %s48_s11, 0  ;;  %s87_s13 = sand.u32 127, %s1449_s28 }
  0x20   : > { %s88_s15 = sadd.s32 %s666_s12, %s87_s13  ;;  %p100_p9 = scmp.ne.s32.totalorder %s968_s18, %s964_s17 }
  0x21   : > { %s1131_s27 = scalar_select %p49_p8, %s980_s20, %s51_s30  }
  0x22   : > { %s1133_s26 = sld [smem:[#allocation3 + %s88_s15]]  ;;  %p106_p10 = scmp.ne.s32.totalorder %s964_s17, %s960_s16 }
  0x23   : > { %1425 = sst [smem:[#allocation21_spill]] %s1131_s27  ;;  %s1426_s3 = sadd.s32 4294967295, %s1000_s25  }
  0x24   : > { %p132_p11 = scmp.eq.s32.totalorder %s1426_s3, 31  ;;  %p1143_p12 = por %p100_p9, %p59_p2 }
  0x25   : > { %s1428_s8 = sadd.s32 4294967294, %s1000_s25   ;;  %p1151_p0 = por %p106_p10, %p1109_p6 }
  0x26   : > { %p138_p13 = scmp.eq.s32.totalorder %s1428_s8, 31  ;;  %p1158_p3 = por %p132_p11, %p58_p1 }
  0x27   : > { %p707_p2 = scmp.lt.s32.totalorder %s1000_s25, 32  ;;  %s158_s9 = sand.u32 1, %s980_s20  }
  0x28   : > { %p1165_p8 = por %p138_p13, %p64_p4  ;;  %s669_s6 = sshll.u32 %s158_s9, 3 }
  0x29   : > { %s670_s10 = sshll.u32 %s996_s24, 4  ;;  %s162_s12 = scalar_lea.vmem [#allocation4], %s669_s6 }
  0x2a   : > { %s166_s11 = sadd.s32 %s992_s23, %s670_s10  ;;  %s172_s13 = sshll.u32 %s162_s12, 4  ;;  %s173_s13 = int_to_ptr.vmem [resolvable:$true] %s172_s13 }
  0x2b   : > { %s671_s15 = sshll.u32 %s166_s11, 3  ;;  %s1432_s1 = sld [smem:[#allocation22_spill]] }
  0x2c   : > { %p695_p1 = pnand %p707_p2, %p1103_p5  ;;  %p676_p4 = scmp.ge.s32.totalorder %s1000_s25, 1 }
  0x2d   : > { %s159_s6 = scalar_lea.sflag [#allocation5], %s158_s9  ;;  %p207_p6 = scmp.lt.s32.totalorder %s1000_s25, 33 }
  0x2e   : > { %s1433_s10 = sshra.s32 %s992_s23, 7  ;;  %s79_s5 = sand.u32 127, %s992_s23 }
  0x2f   : > { %s76_s14 = sadd.s32 %s996_s24, %s1433_s10  ;;  %p1186_p9 = pnand %p676_p4, %p207_p6 }
  0x30   : > { %s665_s11 = sshll.u32 %s76_s14, 7  ;;  %s179_s8 = sand.u32 1, %s968_s18  }
  0x31   : > { %s168_s29 = scalar_lea.hbm %s1432_s1, %s671_s15  ;;  %s93_s1 = sadd.s32 1, %s968_s18 }
  0x32   : > { %s170_s28 = sshll.u32 %s168_s29, 4  ;;  %s80_s29 = sadd.s32 %s665_s11, %s79_s5  ;;  %s171_s28 = int_to_ptr.hbm [resolvable:$true] %s170_s28 }
  0x33   : > { %697 = dma.hbm_to_vmem [thread:$0]  (!%p695_p1), %s171_s28, 128, %s173_s13, %s159_s6  }
  0x34   : > { %s81_s15 = sld [smem:[#allocation3 + %s80_s29]]  ;;  %s672_s27 = sshll.u32 %s179_s8, 6 }
  0x35   : > { %s687_s9 = scalar_select %p1143_p12, [#allocation3], [#allocation10] }
  0x36   : > { %s1455_s29 = smov (!%p1143_p12, %s80_s29), 0  ;;  %p1203_p5 = pnand %p707_p2, %p1143_p12 }
  0x37   : > { %s1457_s9 = smov (!%p707_p2, %s687_s9), [#allocation11]  ;;  %s1459_s29 = smov (!%p707_p2, %s1455_s29), 0 }
  0x38   : > { %s191_s10 = sld [smem:[%s1457_s9 + %s1459_s29]]  ;;  %s183_s14 = scalar_lea.vmem [#allocation7], %s672_s27 }
  0x39   : > { %s199_s11 = sshll.u32 %s183_s14, 4  ;;  %p846_p12 = pneg %p1203_p5  ;;  %s200_s11 = int_to_ptr.vmem [resolvable:$true] %s199_s11 }
  0x3a   : > { %s90_s28 = ssub.s32 %s81_s15, %s1133_s26  ;;  %s180_s15 = scalar_lea.sflag [#allocation8], %s179_s8 }
  0x3b   : > { %p91_p10 = scmp.eq.s32.totalorder %s90_s28, 0  ;;  %s849_s29 = scalar_lea.hbm %s1406_s2, 2048 }
  0x3d   : > { %s1210_s6 = scalar_select %p91_p10, %s968_s18, %s93_s1  }
  0x3e   : > { %s685_s5 = sshll.u32 %s191_s10, 6 }
  0x3f   : > { %s196_s26 = scalar_lea.hbm %s1406_s2, %s685_s5 }
  0x40   : > { %s197_s4 = sshll.u32 %s196_s26, 4  ;;  %s198_s4 = int_to_ptr.hbm [resolvable:$true] %s197_s4 }
  0x41   : > { %s842_s20 = sshra.s32 %s198_s4, 4  ;;  %s843_s20 = int_to_ptr.hbm [resolvable:$true] %s842_s20 }
  0x42   : > { %s844_s28 = scalar_lea.hbm %s843_s20, 64  ;;  %p850_p1 = scmp.lt.s32.totalorder %s843_s20, %s1406_s2 }
  0x43   : > { %p845_p11 = scmp.ne.s32.totalorder %s843_s20, %s844_s28  ;;  %p851_p4 = scmp.lt.s32.totalorder %s849_s29, %s844_s28 }
  0x45   : > { %p847_p13 = pnand %p846_p12, %p845_p11  ;;  %p852_p6 = por %p851_p4, %p850_p1 }
  0x47   : > { %p848_p2 = pneg %p847_p13 }
  0x49   : > { %p853_p10 = pnand %p852_p6, %p848_p2 }
  0x4b   : > { %856 = shalt.err (!%p853_p10)
}
  0x4c   : > { %s1003_s23 = smov 128   ;;  %s1004_s24 = smov 8  }
  0x4d   : > { %702 = dma.hbm_to_vmem [thread:$0]  (!%p1203_p5), %s198_s4, 1024, %s200_s11, %s180_s15, %s1003_s23, %s1003_s23, %s1004_s24  }
  0x4e   : > { %211 = sbr.rel (%p1186_p9) target bundleno = 294 (0x126), region = 28  ;;  %s1228_s8 = sand.u32 (!%p1186_p9), 1, %s976_s0  }
  0x4f   : > { %s677_s20 = sshll.u32 (!%p1186_p9), %s1228_s8, 3  ;;  %s214_s14 = scalar_lea.sflag (!%p1186_p9), [#allocation5], %s1228_s8 }
  0x50   : > { %s1234_s5 = scalar_lea.vmem (!%p1186_p9), [#allocation4], %s677_s20 }
  0x53   : > { %947 = dma.done.wait (%p1120_p7), %s214_s14, 128  }
  0x54   : > { %949 = vsyncadd (%p1120_p7), %s214_s14, 4294967168  ;;  %s223_s12 = sand.u32 1, %s964_s17  }
  0x55   : > { %s678_s13 = sshll.u32 %s223_s12, 6  ;;  %s224_s11 = scalar_lea.sflag [#allocation8], %s223_s12 }
  0x56   : > { %s1241_s26 = scalar_lea.vmem [#allocation7], %s678_s13 }
  0x57   : > { %951 = dma.done.wait (%p1151_p0), %s224_s11, 1024  }
  0x58   : > { %953 = vsyncadd (%p1151_p0), %s224_s11, 4294966272  ;;  %vm271_vm0 = vcmask 523264   ;;  %v270_v0 = vld [vmem:[%s1241_s26 + $0x38] sm:$0xff]  ;;  %v269_v1 = vld [vmem:[%s1241_s26 + $0x30] sm:$0xff]  ;;  %s681_s7 = sshll.u32 %s988_s22, 4  ;;  %s1436_s1 = sld [smem:[#allocation23_spill]] }
  0x59   : > { %v268_v2 = vld [vmem:[%s1241_s26 + $0x28] sm:$0xff]  ;;  %v297_v3 = vsel %vm271_vm0, %v270_v0, 0  ;;  %v294_v4 = vsel %vm271_vm0, %v269_v1, 0  ;;  %v267_v6 = vld [vmem:[%s1241_s26 + $0x20] sm:$0xff]  ;;  %v266_v7 = vld [vmem:[%s1241_s26 + $0x18] sm:$0xff]  ;;  %s548_s30 = sadd.s32 %s984_s21, %s681_s7  ;;  %s253_s29 = scalar_lea.vmem [#allocation9], %s677_s20 }
  0x5a   : > { %v291_v5 = vsel %vm271_vm0, %v268_v2, 0  ;;  %v1255_v8 = vand.u32 4294901760, %v297_v3  ;;  %v1257_v9 = vand.u32 4294901760, %v294_v4  ;;  %v288_v11 = vsel %vm271_vm0, %v267_v6, 0  ;;  %v265_v17 = vld [vmem:[%s1241_s26 + $0x10] sm:$0xff]  ;;  %v264_v26 = vld [vmem:[%s1241_s26 + $0x8] sm:$0xff] }
  0x5b   : > { %v1259_v10 = vand.u32 4294901760, %v291_v5  ;;  %v1262_v12 = vand.u32 4294901760, %v288_v11  ;;  %v285_v16 = vsel %vm271_vm0, %v266_v7, 0  ;;  %v282_v21 = vsel %vm271_vm0, %v265_v17, 0  ;;  %v263_v34 = vld [vmem:[%s1241_s26] sm:$0xff]  ;;  %v262_v41 = vld [vmem:[%s1234_s5] sm:$0xff] }
  0x5c   : > { %308 = vmatpush.xpose.msra.mxu0 %v1255_v8  ;;  %v1266_v13 = vsub.f32 %v297_v3, %v1255_v8  ;;  %v1269_v14 = vsub.f32 %v294_v4, %v1257_v9  ;;  %440 = vmatpush.xpose.msra.mxu3 %v1255_v8  ;;  %v1280_v20 = vand.u32 4294901760, %v285_v16  ;;  %v1297_v28 = vand.u32 4294901760, %v282_v21  ;;  %s682_s4 = sshll.u32 %s548_s30, 3  ;;  %s552_s9 = sshll.u32 %s253_s29, 4  ;;  %s553_s9 = int_to_ptr.vmem [resolvable:$true] %s552_s9 }
  0x5d   : > { %v1272_v15 = vsub.f32 %v291_v5, %v1259_v10  ;;  %v1292_v25 = vsub.f32 %v288_v11, %v1262_v12  ;;  %v279_v29 = vsel %vm271_vm0, %v264_v26, 0  ;;  %v276_v36 = vsel %vm271_vm0, %v263_v34, 0  ;;  %s538_s21 = scalar_lea.sflag [#allocation6], %s1228_s8 }
  0x5e   : > { %v342_v18 = vand.u32 4294901760, %v1266_v13  ;;  %v348_v19 = vand.u32 4294901760, %v1269_v14  ;;  %403 = vmatpush.xpose.msra.mxu2 %v1266_v13  ;;  %v1306_v33 = vsub.f32 %v285_v16, %v1280_v20  ;;  %v1311_v35 = vand.u32 4294901760, %v279_v29  ;;  %s550_s27 = scalar_lea.hbm %s1436_s1, %s682_s4  ;;  %s892_s20 = scalar_lea.hbm %s1436_s1, 256 }
  0x5f   : > { %v354_v24 = vand.u32 4294901760, %v1272_v15  ;;  %v360_v32 = vand.u32 4294901760, %v1292_v25  ;;  %v371_v40 = vsub.f32 %v282_v21, %v1297_v28  ;;  %v273_v42 = vsel %vm271_vm0, %v262_v41, 0  ;;  %s554_s10 = sshll.u32 %s550_s27, 4  ;;  %s555_s10 = int_to_ptr.hbm [resolvable:$true] %s554_s10 }
  0x60   : > { %310 = vmatpush.xpose.msra.mxu0 %v1257_v9  ;;  %v343_v22 = vsub.f32 %v1266_v13, %v342_v18  ;;  %v349_v23 = vsub.f32 %v1269_v14, %v348_v19  ;;  %442 = vmatpush.xpose.msra.mxu3 %v1257_v9  ;;  %v366_v39 = vand.u32 4294901760, %v1306_v33  ;;  %v323_v43 = vand.u32 4294901760, %v273_v42  ;;  %s886_s22 = sshra.s32 %s555_s10, 4  ;;  %s887_s22 = int_to_ptr.hbm [resolvable:$true] %s886_s22 }
  0x61   : > { %v355_v31 = vsub.f32 %v1272_v15, %v354_v24  ;;  %v361_v38 = vsub.f32 %v1292_v25, %v360_v32  ;;  %v321_v44 = vand.u32 4294901760, %v276_v36  ;;  %v377_v45 = vsub.f32 %v279_v29, %v1311_v35  ;;  %s888_s23 = scalar_lea.hbm %s887_s22, 8  ;;  %p893_p5 = scmp.lt.s32.totalorder %s887_s22, %s1436_s1 }
  0x62   : > { %v344_v27 = vand.u32 4294901760, %v343_v22  ;;  %406 = vmatpush.xpose.msra.mxu2 %v1269_v14  ;;  %v350_v30 = vand.u32 4294901760, %v349_v23  ;;  %v367_v47 = vsub.f32 %v1306_v33, %v366_v39  ;;  %v372_v48 = vand.u32 4294901760, %v371_v40  ;;  %p889_p7 = scmp.ne.s32.totalorder %s887_s22, %s888_s23  ;;  %p894_p11 = scmp.lt.s32.totalorder %s892_s20, %s888_s23 }
  0x63   : > { %v356_v37 = vand.u32 4294901760, %v355_v31  ;;  %v362_v46 = vand.u32 4294901760, %v361_v38  ;;  %v324_v49 = vsub.f32 %v273_v42, %v323_v43  ;;  %v378_v53 = vand.u32 4294901760, %v377_v45 }
  0x64   : > { %345 = vmatpush.xpose.msra.mxu1 %v344_v27  ;;  %312 = vmatpush.xpose.msra.mxu0 %v1259_v10  ;;  %v368_v51 = vand.u32 4294901760, %v367_v47  ;;  %v373_v52 = vsub.f32 %v371_v40, %v372_v48  ;;  %v383_v54 = vsub.f32 %v276_v36, %v321_v44  ;;  %p890_p0 = pnand %p889_p7, %p1158_p3  ;;  %p895_p12 = por %p894_p11, %p893_p5 }
  0x65   : > { %444 = vmatpush.xpose.msra.mxu3 %v1259_v10  ;;  %v325_v50 = vand.u32 4294901760, %v324_v49  ;;  %v379_v57 = vsub.f32 %v377_v45, %v378_v53 }
  0x66   : > { %409 = vmatpush.xpose.msra.mxu2 %v1272_v15  ;;  %v374_v56 = vand.u32 4294901760, %v373_v52  ;;  %v384_v58 = vand.u32 4294901760, %v383_v54  ;;  %p891_p9 = pneg %p890_p0 }
  0x67   : > { %v326_v55 = vsub.f32 %v324_v49, %v325_v50  ;;  %v380_v60 = vand.u32 4294901760, %v379_v57 }
  0x68   : > { %351 = vmatpush.xpose.msra.mxu1 %v350_v30  ;;  %314 = vmatpush.xpose.msra.mxu0 %v1262_v12  ;;  %v385_v61 = vsub.f32 %v383_v54, %v384_v58  ;;  %p896_p13 = pnand %p895_p12, %p891_p9 }
  0x69   : > { %446 = vmatpush.xpose.msra.mxu3 %v1262_v12  ;;  %v327_v59 = vand.u32 4294901760, %v326_v55 }
  0x6a   : > { %412 = vmatpush.xpose.msra.mxu2 %v1292_v25  ;;  %v386_v62 = vand.u32 4294901760, %v385_v61 }
  0x6c   : > { %357 = vmatpush.xpose.msra.mxu1 %v356_v37  ;;  %316 = vmatpush.xpose.msra.mxu0 %v1280_v20 }
  0x6d   : > { %448 = vmatpush.xpose.msra.mxu3 %v1280_v20 }
  0x6e   : > { %415 = vmatpush.xpose.msra.mxu2 %v1306_v33 }
  0x70   : > { %363 = vmatpush.xpose.msra.mxu1 %v362_v46  ;;  %318 = vmatpush.xpose.msra.mxu0 %v1297_v28 }
  0x71   : > { %450 = vmatpush.xpose.msra.mxu3 %v1297_v28 }
  0x72   : > { %418 = vmatpush.xpose.msra.mxu2 %v371_v40 }
  0x74   : > { %369 = vmatpush.xpose.msra.mxu1 %v368_v51  ;;  %320 = vmatpush.xpose.msra.mxu0 %v1311_v35 }
  0x75   : > { %452 = vmatpush.xpose.msra.mxu3 %v1311_v35 }
  0x76   : > { %421 = vmatpush.xpose.msra.mxu2 %v377_v45 }
  0x78   : > { %375 = vmatpush.xpose.msra.mxu1 %v374_v56  ;;  %322 = vmatpush.xpose.msra.mxu0 %v321_v44 }
  0x79   : > { %454 = vmatpush.xpose.msra.mxu3 %v321_v44 }
  0x7a   : > { %424 = vmatpush.xpose.msra.mxu2 %v383_v54 }
  0x7b   : > { %328 = vmatmul.f32.vlgmr.msra.gmra.mxu0 %v327_v59 }
  0x7c   : > { %473 = vmatpush.xpose.msrb.mxu0 %v342_v18  ;;  %381 = vmatpush.xpose.msra.mxu1 %v380_v60 }
  0x7d   : > { %458 = vmatmul.f32.vlgmr.msra.gmra.mxu3 %v325_v50  ;;  %427 = vmatmul.f32.vlgmr.msra.gmra.mxu2 %v324_v49 }
  0x80   : > { %477 = vmatpush.xpose.msrb.mxu0 %v348_v19  ;;  %387 = vmatpush.xpose.msra.mxu1 %v386_v62 }
  0x83   : > { %389 = vmatmul.f32.vlgmr.msra.gmra.mxu1 %v323_v43 }
  0x84   : > { %516 = vmatpush.xpose.msrb.mxu1 %v1255_v8  ;;  %481 = vmatpush.xpose.msrb.mxu0 %v354_v24 }
  0x88   : > { %518 = vmatpush.xpose.msrb.mxu1 %v1257_v9  ;;  %485 = vmatpush.xpose.msrb.mxu0 %v360_v32 }
  0x8c   : > { %520 = vmatpush.xpose.msrb.mxu1 %v1259_v10  ;;  %489 = vmatpush.xpose.msrb.mxu0 %v366_v39 }
  0x90   : > { %522 = vmatpush.xpose.msrb.mxu1 %v1262_v12  ;;  %493 = vmatpush.xpose.msrb.mxu0 %v372_v48 }
  0x94   : > { %524 = vmatpush.xpose.msrb.mxu1 %v1280_v20  ;;  %497 = vmatpush.xpose.msrb.mxu0 %v378_v53 }
  0x98   : > { %526 = vmatpush.xpose.msrb.mxu1 %v1297_v28  ;;  %501 = vmatpush.xpose.msrb.mxu0 %v384_v58 }
  0x9b   : > { %503 = vmatmul.f32.vlgmr.msrb.gmra.mxu0 %v323_v43 }
  0x9c   : > { %528 = vmatpush.xpose.msrb.mxu1 %v1311_v35 }
  0xa0   : > { %530 = vmatpush.xpose.msrb.mxu1 %v321_v44 }
  0xa3   : > { %532 = vmatmul.f32.vlgmr.msrb.gmra.mxu1 %v323_v43 }
  0xf8   : > { %v329_v0 = vpop.f32.mrf.mxu0 }
 0x100   : > { %v390_v63 = vpop.f32.mrf.mxu1  ;;  %v428_v2 = vpop.f32.mrf.mxu2 }
 0x101   : > { %v391_v1 = vadd.f32 %v390_v63, %v329_v0  ;;  %v459_v4 = vpop.f32.mrf.mxu3 }
 0x103   : > { %v429_v3 = vadd.f32 %v428_v2, %v391_v1 }
 0x105   : > { %v460_v5 = vadd.f32 %v459_v4, %v429_v3 }
 0x118   : > { %v504_v6 = vpop.f32.mrf.mxu0 }
 0x119   : > { %v505_v7 = vadd.f32 %v504_v6, %v460_v5 }
 0x120   : > { %v533_v8 = vpop.f32.mrf.mxu1 }
 0x121   : > { %v534_v9 = vadd.f32 %v533_v8, %v505_v7 }
 0x123   : > { %536 = vst.msk [vmem:[%s253_s29] sm:$0xff] %vm271_vm0, %v534_v9 }
 0x124   : > { %899 = shalt.err (!%p896_p13)
}
 0x125   : > { %692 = dma.vmem_to_hbm [thread:$0]  (%p1158_p3), %s553_s9, 128, %s555_s10, %s538_s21  }
 0x126 PF: > { %p708_p2 = scmp.ge.s32.totalorder %s1000_s25, 2  ;;  %s566_s8 = sand.u32 1, %s972_s19  }
 0x127   : > { %s567_s13 = scalar_lea.sflag [#allocation6], %s566_s8 }
 0x128   : > { %p704_p1 = pnand %p708_p2, %p1165_p8 }
 0x12a   : > { %p705_p4 = pneg %p704_p1 }
 0x12c   : > { %955 = dma.done.wait (%p705_p4), %s567_s13, 128  }
 0x12d   : > { %957 = vsyncadd (%p705_p4), %s567_s13, 4294967168  ;;  %s30_s25 = sadd.s32 1, %s1000_s25   ;;  %s1437_s11 = sld [smem:[#allocation16_spill]] }
 0x12e   : > { %p27_p6 = scmp.ge.s32.totalorder %s30_s25, 34   ;;  %s1438_s20 = sld [smem:[#allocation21_spill]] }
 0x12f   : > { %s1439_s21 = sld [smem:[#allocation17_spill]]  ;;  %s1443_s16 = smov %s964_s17 }
 0x130   : > { %s1440_s22 = sld [smem:[#allocation18_spill]]  ;;  %s1444_s17 = smov %s968_s18 }
 0x131   : > { %s1441_s23 = sld [smem:[#allocation19_spill]]  ;;  %s1445_s18 = smov %s1210_s6 }
 0x132   : > { %s1442_s24 = sld [smem:[#allocation20_spill]]  ;;  %s1446_s19 = smov %s976_s0 }
 0x133   : > { %s1447_s0 = smov %s1437_s11  ;;  %29 = sbr.rel (!%p27_p6) target bundleno = 18 (0x12), region = 86 }
 0x138   :  { %573 = vsyncpa [#allocation5], 1 }
 0x139   :  { %575 = vsyncpa [#allocation5 + $0x1], 1 }
 0x13a   :  { %576 = vsyncpa [#allocation8], 1 }
 0x13b   :  { %578 = vsyncpa [#allocation8 + $0x1], 1 }
 0x13c   :  { %579 = vsyncpa [#allocation6], 1 }
 0x13d   :  { %581 = vsyncpa [#allocation6 + $0x1], 1 }

</bundles_post_ra>
